<compile_context>
chip_gen: v7x
topology: tpu7x:2x2x1
jax: 0.10.0
libtpu: 0.0.40
codegen_flags: <defaults>
</compile_context>

<pallas_src>
import jax
import jax.numpy as jnp
from jax.experimental import pallas as pl
from jax.experimental.pallas import tpu as pltpu


def transition_kernel(z_ref, u_ref, m_ref, wu_ref, n_ref, h_ref, hz_ref, a_ref,
                      o_ref):
    # z_ref : (dz, tile)   u_ref : (du, tile)
    # m_ref : (N, dz)      wu_ref: (N, du)    n_ref: (dz, N)  (already scaled)
    # h_ref : (N, 1)       hz_ref: (dz, 1)    a_ref: (dz, 1)
    z = z_ref[...]
    # X = m @ z + Wu @ u          -> (N, tile)
    x = jnp.dot(m_ref[...], z, preferred_element_type=jnp.float32)
    x = x + jnp.dot(wu_ref[...], u_ref[...],
                    preferred_element_type=jnp.float32)
    # R = relu(X - h)             (h broadcasts over lanes)
    r = jnp.maximum(x - h_ref[...], 0.0)
    # z' = A * z + (n * scaling) @ R + hz   -> (dz, tile)
    proj = jnp.dot(n_ref[...], r, preferred_element_type=jnp.float32)
    o_ref[...] = a_ref[...] * z + proj + hz_ref[...]


def _pick_lane_tile(tk, max_tile=1024):
    """Choose a lane tile (multiple of 128 when tiling) and padding."""
    if tk <= max_tile:
        # Full-extent last dim is always legal regardless of 128-divisibility.
        return tk, 0
    tile = max_tile
    pad = (-tk) % tile
    return tile, pad


def transition_forward(z, u, params):
    """z: (B, dz, T, K), u: (B, du, T, K) -> (B, dz, T, K)"""
    B, dz, T, K = z.shape
    du = u.shape[1]
    N = params["m"].shape[0]
    TK = T * K

    tile, pad = _pick_lane_tile(TK)
    TKp = TK + pad

    # Free reshapes: (B, dz, T, K) -> (B, dz, T*K); pad lane axis if tiled.
    z3 = z.reshape(B, dz, TK).astype(jnp.float32)
    u3 = u.reshape(B, du, TK).astype(jnp.float32)
    if pad:
        z3 = jnp.pad(z3, ((0, 0), (0, 0), (0, pad)))
        u3 = jnp.pad(u3, ((0, 0), (0, 0), (0, pad)))

    # Weights pre-oriented so the kernel does no transposes.
    m = params["m"].astype(jnp.float32)                                # (N, dz)
    wu = params["Wu"].astype(jnp.float32)                              # (N, du)
    n_scaled = (params["n"] * params["scaling"]).astype(jnp.float32)   # (dz, N)
    h2 = params["h"].reshape(N, 1).astype(jnp.float32)
    hz2 = params["hz"].reshape(dz, 1).astype(jnp.float32)
    a2 = params["AW"].reshape(dz, 1).astype(jnp.float32)

    num_tiles = TKp // tile

    out3 = pl.pallas_call(
        transition_kernel,
        out_shape=jax.ShapeDtypeStruct((B, dz, TKp), jnp.float32),
        grid_spec=pltpu.PrefetchScalarGridSpec(
            num_scalar_prefetch=0,
            grid=(B, num_tiles),
            in_specs=[
                # batch dim squeezed out of the kernel view
                pl.BlockSpec((None, dz, tile), lambda b, j: (b, 0, j)),  # z
                pl.BlockSpec((None, du, tile), lambda b, j: (b, 0, j)),  # u
                pl.BlockSpec((N, dz), lambda b, j: (0, 0)),              # m
                pl.BlockSpec((N, du), lambda b, j: (0, 0)),              # Wu
                pl.BlockSpec((dz, N), lambda b, j: (0, 0)),              # n*scal
                pl.BlockSpec((N, 1), lambda b, j: (0, 0)),               # h
                pl.BlockSpec((dz, 1), lambda b, j: (0, 0)),              # hz
                pl.BlockSpec((dz, 1), lambda b, j: (0, 0)),              # A diag
            ],
            out_specs=pl.BlockSpec((None, dz, tile), lambda b, j: (b, 0, j)),
        ),
        compiler_params=pltpu.CompilerParams(
            dimension_semantics=("parallel", "parallel")),
    )(z3, u3, m, wu, n_scaled, h2, hz2, a2)

    if pad:
        out3 = out3[:, :, :TK]
    return out3.reshape(B, dz, T, K)


def reference_forward(z, u, params):
    """Pure-JAX reference mirroring the PyTorch forward exactly."""
    A = params["AW"][None, :, None, None]
    X = jnp.einsum("Nz,BzTK->BNTK", params["m"], z)
    X = X + jnp.einsum("Nu,BuTK->BNTK", params["Wu"], u)
    R = jnp.maximum(X - params["h"][None, :, None, None], 0.0)
    out = (A * z
           + jnp.einsum("zN,BNTK->BzTK", params["n"] * params["scaling"], R)
           + params["hz"][None, :, None, None])
    return out


def init_params(key, dz, du, hidden_dim):
    """Deterministic synthetic init matching the module's parameter shapes."""
    k1, k2, k3, k4 = jax.random.split(key, 4)
    r = 1.0 / jnp.sqrt(hidden_dim)
    return {
        # AW -> A diag (non-shared tau, no exp param): shape (dz,)
        "AW": jax.random.uniform(k1, (dz,), jnp.float32, 0.5, 1.0),
        # m: (hidden_dim, dz), n: (dz, hidden_dim)  (uniform init)
        "m": jax.random.uniform(k2, (hidden_dim, dz), jnp.float32, -r, r),
        "n": jax.random.uniform(k3, (dz, hidden_dim), jnp.float32, -r, r),
        # relu config -> neuron bias h initialized to zeros
        "h": jnp.zeros((hidden_dim,), jnp.float32),
        "hz": jnp.zeros((dz,), jnp.float32),
        "Wu": jax.random.uniform(k4, (hidden_dim, du), jnp.float32, -r, r),
        "scaling": jnp.float32(1.0),
    }


if __name__ == "__main__":
    B, dz, du, T, K = 2, 4, 2, 8, 2
    hidden_dim = 32

    key = jax.random.PRNGKey(0)
    kp, kz, ku = jax.random.split(key, 3)
    params = init_params(kp, dz, du, hidden_dim)
    z = jax.random.normal(kz, (B, dz, T, K), jnp.float32)
    u = jax.random.normal(ku, (B, du, T, K), jnp.float32)

    out = transition_forward(z, u, params)
    out = jax.block_until_ready(out)

    ref = reference_forward(z, u, params)
    assert out.shape == (B, dz, T, K)
    assert jnp.allclose(out, ref, atol=1e-5, rtol=1e-5)
    print("KERNEL_OK")
</pallas_src>

<mosaic_0001>
module attributes {stable_mosaic.version = 11 : i64} {
  func.func @transition_kernel(%arg0: i32, %arg1: i32, %arg2: memref<1x4x16xf32, #tpu.memory_space<vmem>>, %arg3: memref<1x2x16xf32, #tpu.memory_space<vmem>>, %arg4: memref<32x4xf32, #tpu.memory_space<vmem>>, %arg5: memref<32x2xf32, #tpu.memory_space<vmem>>, %arg6: memref<4x32xf32, #tpu.memory_space<vmem>>, %arg7: memref<32x1xf32, #tpu.memory_space<vmem>>, %arg8: memref<4x1xf32, #tpu.memory_space<vmem>>, %arg9: memref<4x1xf32, #tpu.memory_space<vmem>>, %arg10: memref<1x4x16xf32, #tpu.memory_space<vmem>>) attributes {dimension_semantics = [#tpu.dimension_semantics<parallel>, #tpu.dimension_semantics<parallel>], iteration_bounds = array<i64: 2, 1>, scalar_prefetch = 0 : i64, scratch_operands = 0 : i64, tpu.core_type = #tpu.core_type<tc>, window_params = [{transform_indices = @transform_0, window_bounds = array<i64: 1, 4, 16>}, {transform_indices = @transform_1, window_bounds = array<i64: 1, 2, 16>}, {pipeline_mode = #tpu.pipeline_mode<synchronous>, transform_indices = @transform_2, window_bounds = array<i64: 32, 4>}, {pipeline_mode = #tpu.pipeline_mode<synchronous>, transform_indices = @transform_3, window_bounds = array<i64: 32, 2>}, {pipeline_mode = #tpu.pipeline_mode<synchronous>, transform_indices = @transform_4, window_bounds = array<i64: 4, 32>}, {pipeline_mode = #tpu.pipeline_mode<synchronous>, transform_indices = @transform_5, window_bounds = array<i64: 32, 1>}, {pipeline_mode = #tpu.pipeline_mode<synchronous>, transform_indices = @transform_6, window_bounds = array<i64: 4, 1>}, {pipeline_mode = #tpu.pipeline_mode<synchronous>, transform_indices = @transform_7, window_bounds = array<i64: 4, 1>}, {transform_indices = @transform_8, window_bounds = array<i64: 1, 4, 16>}]} {
    %c0 = arith.constant 0 : index
    %c0_0 = arith.constant 0 : index
    %c0_1 = arith.constant 0 : index
    %0 = vector.load %arg2[%c0, %c0_0, %c0_1] : memref<1x4x16xf32, #tpu.memory_space<vmem>>, vector<1x4x16xf32>
    %1 = vector.shape_cast %0 : vector<1x4x16xf32> to vector<4x16xf32>
    %c0_2 = arith.constant 0 : index
    %c0_3 = arith.constant 0 : index
    %2 = vector.load %arg4[%c0_2, %c0_3] : memref<32x4xf32, #tpu.memory_space<vmem>>, vector<32x4xf32>
    %cst = arith.constant dense<0.000000e+00> : vector<32x16xf32>
    %3 = tpu.matmul %2, %1, %cst {dimension_numbers = #tpu.dot_dimension_numbers<[1], [0], [0], [1], [0, 0, 1, 1], [], []>} : vector<32x4xf32>, vector<4x16xf32>, vector<32x16xf32> -> vector<32x16xf32>
    %c0_4 = arith.constant 0 : index
    %c0_5 = arith.constant 0 : index
    %4 = vector.load %arg5[%c0_4, %c0_5] : memref<32x2xf32, #tpu.memory_space<vmem>>, vector<32x2xf32>
    %c0_6 = arith.constant 0 : index
    %c0_7 = arith.constant 0 : index
    %c0_8 = arith.constant 0 : index
    %5 = vector.load %arg3[%c0_6, %c0_7, %c0_8] : memref<1x2x16xf32, #tpu.memory_space<vmem>>, vector<1x2x16xf32>
    %6 = vector.shape_cast %5 : vector<1x2x16xf32> to vector<2x16xf32>
    %cst_9 = arith.constant dense<0.000000e+00> : vector<32x16xf32>
    %7 = tpu.matmul %4, %6, %cst_9 {dimension_numbers = #tpu.dot_dimension_numbers<[1], [0], [0], [1], [0, 0, 1, 1], [], []>} : vector<32x2xf32>, vector<2x16xf32>, vector<32x16xf32> -> vector<32x16xf32>
    %8 = arith.addf %3, %7 : vector<32x16xf32>
    %c0_10 = arith.constant 0 : index
    %c0_11 = arith.constant 0 : index
    %9 = vector.load %arg7[%c0_10, %c0_11] : memref<32x1xf32, #tpu.memory_space<vmem>>, vector<32x1xf32>
    %10 = vector.broadcast %9 : vector<32x1xf32> to vector<32x16xf32>
    %11 = arith.subf %8, %10 : vector<32x16xf32>
    %cst_12 = arith.constant 0.000000e+00 : f32
    %12 = vector.broadcast %cst_12 : f32 to vector<32x16xf32>
    %13 = arith.maximumf %11, %12 : vector<32x16xf32>
    %c0_13 = arith.constant 0 : index
    %c0_14 = arith.constant 0 : index
    %14 = vector.load %arg6[%c0_13, %c0_14] : memref<4x32xf32, #tpu.memory_space<vmem>>, vector<4x32xf32>
    %cst_15 = arith.constant dense<0.000000e+00> : vector<4x16xf32>
    %15 = tpu.matmul %14, %13, %cst_15 {dimension_numbers = #tpu.dot_dimension_numbers<[1], [0], [0], [1], [0, 0, 1, 1], [], []>} : vector<4x32xf32>, vector<32x16xf32>, vector<4x16xf32> -> vector<4x16xf32>
    %c0_16 = arith.constant 0 : index
    %c0_17 = arith.constant 0 : index
    %16 = vector.load %arg9[%c0_16, %c0_17] : memref<4x1xf32, #tpu.memory_space<vmem>>, vector<4x1xf32>
    %17 = vector.broadcast %16 : vector<4x1xf32> to vector<4x16xf32>
    %18 = arith.mulf %17, %1 : vector<4x16xf32>
    %19 = arith.addf %18, %15 : vector<4x16xf32>
    %c0_18 = arith.constant 0 : index
    %c0_19 = arith.constant 0 : index
    %20 = vector.load %arg8[%c0_18, %c0_19] : memref<4x1xf32, #tpu.memory_space<vmem>>, vector<4x1xf32>
    %21 = vector.broadcast %20 : vector<4x1xf32> to vector<4x16xf32>
    %22 = arith.addf %19, %21 : vector<4x16xf32>
    %c0_20 = arith.constant 0 : index
    %c0_21 = arith.constant 0 : index
    %c0_22 = arith.constant 0 : index
    %23 = vector.load %arg10[%c0_20, %c0_21, %c0_22] : memref<1x4x16xf32, #tpu.memory_space<vmem>>, vector<1x4x16xf32>
    %24 = vector.shape_cast %23 : vector<1x4x16xf32> to vector<4x16xf32>
    %25 = vector.shape_cast %22 : vector<4x16xf32> to vector<1x4x16xf32>
    tpu.vector_store %arg10[%c0_20, %c0_21, %c0_22], %25 {strides = array<i32>} : memref<1x4x16xf32, #tpu.memory_space<vmem>>, vector<1x4x16xf32>,
    return
  }
  func.func @transform_0(%arg0: i32, %arg1: i32) -> (i32, i32, i32) {
    %c0_i32 = arith.constant 0 : i32
    %c0_i32_0 = arith.constant 0 : i32
    return %arg0, %c0_i32, %arg1 : i32, i32, i32
  }
  func.func @transform_1(%arg0: i32, %arg1: i32) -> (i32, i32, i32) {
    %c0_i32 = arith.constant 0 : i32
    %c0_i32_0 = arith.constant 0 : i32
    return %arg0, %c0_i32, %arg1 : i32, i32, i32
  }
  func.func @transform_2(%arg0: i32, %arg1: i32) -> (i32, i32) {
    %c0_i32 = arith.constant 0 : i32
    %c0_i32_0 = arith.constant 0 : i32
    %c0_i32_1 = arith.constant 0 : i32
    return %c0_i32, %c0_i32_0 : i32, i32
  }
  func.func @transform_3(%arg0: i32, %arg1: i32) -> (i32, i32) {
    %c0_i32 = arith.constant 0 : i32
    %c0_i32_0 = arith.constant 0 : i32
    %c0_i32_1 = arith.constant 0 : i32
    return %c0_i32, %c0_i32_0 : i32, i32
  }
  func.func @transform_4(%arg0: i32, %arg1: i32) -> (i32, i32) {
    %c0_i32 = arith.constant 0 : i32
    %c0_i32_0 = arith.constant 0 : i32
    %c0_i32_1 = arith.constant 0 : i32
    return %c0_i32, %c0_i32_0 : i32, i32
  }
  func.func @transform_5(%arg0: i32, %arg1: i32) -> (i32, i32) {
    %c0_i32 = arith.constant 0 : i32
    %c0_i32_0 = arith.constant 0 : i32
    %c0_i32_1 = arith.constant 0 : i32
    return %c0_i32, %c0_i32_0 : i32, i32
  }
  func.func @transform_6(%arg0: i32, %arg1: i32) -> (i32, i32) {
    %c0_i32 = arith.constant 0 : i32
    %c0_i32_0 = arith.constant 0 : i32
    %c0_i32_1 = arith.constant 0 : i32
    return %c0_i32, %c0_i32_0 : i32, i32
  }
  func.func @transform_7(%arg0: i32, %arg1: i32) -> (i32, i32) {
    %c0_i32 = arith.constant 0 : i32
    %c0_i32_0 = arith.constant 0 : i32
    %c0_i32_1 = arith.constant 0 : i32
    return %c0_i32, %c0_i32_0 : i32, i32
  }
  func.func @transform_8(%arg0: i32, %arg1: i32) -> (i32, i32, i32) {
    %c0_i32 = arith.constant 0 : i32
    %c0_i32_0 = arith.constant 0 : i32
    return %arg0, %c0_i32, %arg1 : i32, i32, i32
  }
}

</mosaic_0001>

<bundles_post_ra>
// kernel: tpu_custom_call.1
= control target key start
LH: loop header
LB: loop body
LE: loop exit
PB: predicated region body
PF: predicated region fallthrough
CT: control target
= control target key end

     0   :  { %13 = vsyncpa [#allocation3], 0  ;;  %s1232_s0 = inlined_call_operand.vmem [shape: f32[2,4,16], index: 0, kind: input, shape index: {}]   ;;  %s1233_s1 = inlined_call_operand.vmem [shape: f32[2,2,16], index: 1, kind: input, shape index: {}]   ;;  %s1234_s2 = inlined_call_operand.vmem [shape: f32[32,4], index: 2, kind: input, shape index: {}]   ;;  %s1235_s3 = inlined_call_operand.vmem [shape: f32[32,2], index: 3, kind: input, shape index: {}]   ;;  %s1236_s4 = inlined_call_operand.vmem [shape: f32[4,32], index: 4, kind: input, shape index: {}]   ;;  %s1237_s5 = inlined_call_operand.vmem [shape: f32[32,1], index: 5, kind: input, shape index: {}]   ;;  %s1238_s6 = inlined_call_operand.vmem [shape: f32[4,1], index: 6, kind: input, shape index: {}]   ;;  %s1239_s7 = inlined_call_operand.vmem [shape: f32[4,1], index: 7, kind: input, shape index: {}]   ;;  %s1240_s8 = inlined_call_operand.hbm [shape: f32[2,4,16], index: 8, kind: output, shape index: {}]  }
   0x1   :  { %15 = vsyncpa [#allocation3 + $0x1], 0  ;;  %s1059_s27 = smov 0   ;;  %s1061_s28 = smov 0  }
   0x2   :  { %s1063_s29 = smov 0   ;;  %s1065_s30 = smov 0  }
   0x3   :  { %s1067_s9 = smov 0   ;;  %s1069_s10 = smov 0  }
   0x4 LB: > { %s793_s11 = sadd.s32 4294967295, %s1007_s10   ;;  %s794_s12 = sadd.s32 4294967294, %s1007_s10   ;;  %s1007_s10 = sphi %s1069_s10, %s21_s10   ;;  %s1003_s9 = sphi %s1067_s9, %s1250_s9   ;;  %s999_s30 = sphi %s1065_s30, %s1249_s30   ;;  %s995_s29 = sphi %s1063_s29, %s1248_s29   ;;  %s991_s28 = sphi %s1061_s28, %s1247_s28   ;;  %s987_s27 = sphi %s1059_s27, %s1246_s27  }
   0x5   : > { %s33_s13 = sadd.s32 1, %s1003_s9  ;;  %s224_s14 = sadd.s32 1, %s995_s29 }
   0x6   : > { %p35_p0 = scmp.ge.s32.totalorder %s33_s13, 2  ;;  %p234_p1 = scmp.ne.s32.totalorder %s995_s29, %s991_s28 }
   0x7   : > { %p235_p2 = scmp.eq.s32.totalorder %s793_s11, 1  ;;  %p240_p3 = scmp.ne.s32.totalorder %s991_s28, %s987_s27 }
   0x8   : > { %s1252_s13 = smov (%p35_p0, %s33_s13), 0  ;;  %p241_p5 = scmp.eq.s32.totalorder %s794_s12, 1 }
   0x9   : > { %1242 = sst [smem:[#allocation5_spill]] %s1252_s13  ;;  %p1099_p4 = por %p235_p2, %p234_p1 }
   0xa   : > { %s219_s16 = ssub.s32 %s1003_s9, %s1252_s13  ;;  %p797_p6 = scmp.ge.s32.totalorder %s1007_s10, 1 }
   0xb   : > { %p222_p7 = scmp.eq.s32.totalorder %s219_s16, 0  ;;  %p1106_p8 = por %p241_p5, %p240_p3 }
   0xc   : > { %p297_p9 = scmp.lt.s32.totalorder %s1007_s10, 3 }
   0xd   : > { %s1112_s18 = scalar_select %p222_p7, %s995_s29, %s224_s14  }
   0xe   : > { %p298_p10 = pnand %p797_p6, %p297_p9 }
   0xf   : > { %p340_p11 = scmp.lt.s32.totalorder (!%p298_p10), %s999_s30, 1  ;;  %v359_v0 = vld [vmem:[%s1235_s3] sm:$0xff] (!%p298_p10)  ;;  %vm364_vm0 = vcmask (!%p298_p10), 15360   ;;  %vm466_vm1 = vcmask (!%p298_p10), 31744   ;;  %v1009_v2 = vmov (!%p298_p10), 0   ;;  %v570_v4 = vld [vmem:[%s1237_s5 + $0x10] sm:$0xff] (!%p298_p10) }
  0x10   : > { %301 = sbr.rel (%p298_p10) target bundleno = 489 (0x1e9), region = 52  ;;  %v355_v1 = vld [vmem:[%s1234_s2] sm:$0xff] (!%p298_p10)  ;;  %833 = vmatprep.mubr.msk.f32.mxu1 (!%p298_p10), %vm364_vm0, %v359_v0  ;;  %927 = vset.pattern.permute.xlu0 (!%p298_p10), %v1009_v2  ;;  %vm377_vm2 = vcmask (!%p298_p10), 1041408   ;;  %vm479_vm3 = vcmask (!%p298_p10), 1043456   ;;  %v360_v5 = vld [vmem:[%s1235_s3 + $0x8] sm:$0xff] (!%p298_p10)  ;;  %v361_v9 = vld [vmem:[%s1235_s3 + $0x10] sm:$0xff] (!%p298_p10) }
  0x11   : > { %841 = vmatprep.mubr.msk.f32.mxu0 (!%p298_p10), %vm466_vm1, %v355_v1  ;;  %v568_v3 = vld [vmem:[%s1237_s5] sm:$0xff] (!%p298_p10)  ;;  %928 = vset.pattern.permute.xlu1 (!%p298_p10), %v1009_v2  ;;  %v356_v8 = vld [vmem:[%s1234_s2 + $0x8] sm:$0xff] (!%p298_p10)  ;;  %v357_v10 = vld [vmem:[%s1234_s2 + $0x10] sm:$0xff] (!%p298_p10)  ;;  %v1010_v17 = vmov (!%p298_p10), 0.0|0.0   ;;  %vm1011_vm4 = vmmov (!%p298_p10), 0   ;;  %v1012_v18 = vmov (!%p298_p10), 0.0  }
  0x12   : > { %574 = vperm.xlu0 (!%p298_p10), %927, %v568_v3   ;;  %584 = vperm.xlu1 (!%p298_p10), %928, %v570_v4   ;;  %v569_v11 = vld [vmem:[%s1237_s5 + $0x8] sm:$0xff] (!%p298_p10)  ;;  %v571_v12 = vld [vmem:[%s1237_s5 + $0x18] sm:$0xff] (!%p298_p10)  ;;  %v675_v15 = vld [vmem:[%s1239_s7] sm:$0xf] (!%p298_p10)  ;;  %vm601_vm5 = vcmask (!%p298_p10), 261120   ;;  %s337_s19 = sand.u32 (!%p298_p10), 1, %s991_s28  }
  0x13   : > { %v362_v13 = vld [vmem:[%s1235_s3 + $0x18] sm:$0xff] (!%p298_p10)  ;;  %v683_v16 = vld [vmem:[%s1238_s6] sm:$0xf] (!%p298_p10)  ;;  %s813_s21 = sshll.u32 (!%p298_p10), %s999_s30, 6  ;;  %vm690_vm6 = vcmask (!%p298_p10), 125952   ;;  %s693_s11 = scalar_lea.sflag (!%p298_p10), [#allocation3], %s337_s19 }
  0x14   : > { %v358_v14 = vld [vmem:[%s1234_s2 + $0x18] sm:$0xff] (!%p298_p10)  ;;  %v600_v45 = vld [vmem:[%s1236_s4] sm:$0xf] (!%p298_p10) }
  0x16   : > { %579 = vperm.xlu0 (!%p298_p10), %927, %v569_v11   ;;  %589 = vperm.xlu1 (!%p298_p10), %928, %v571_v12  }
  0x17   : > { %s341_s23 = scalar_select %p340_p11, %s999_s30, 1 }
  0x19   : > { %s800_s12 = sshll.u32 %s341_s23, 1  ;;  %s799_s14 = sshll.u32 %s341_s23, 2 }
  0x1a   : > { %s353_s20 = scalar_lea.vmem %s1233_s1, %s800_s12  ;;  %s346_s24 = scalar_lea.vmem %s1232_s0, %s799_s14  ;;  %678 = vperm.xlu0 %927, %v675_v15   ;;  %686 = vperm.xlu1 %928, %v683_v16  }
  0x1b   : > { %v363_v6 = vld [vmem:[%s353_s20] sm:$0x3]  ;;  %s798_s20 = sshll.u32 %s337_s19, 2  ;;  %s1185_s23 = scalar_lea.hbm %s1240_s8, %s813_s21 }
  0x1c   : > { %v1139_v7 = vld [vmem:[%s346_s24] sm:$0xf]  ;;  %831 = vmatprep.subr.msk.mxu1 %vm377_vm2, %v363_v6  ;;  %s339_s22 = scalar_lea.vmem [#allocation2], %s798_s20  ;;  %s1013_s12 = smov [#allocation2]  }
  0x1d   : > { %839 = vmatprep.subr.msk.mxu0 %vm479_vm3, %v1139_v7  ;;  %832 = vmatpush3.msk.msra.mxu1 %vm377_vm2, %v363_v6  ;;  %s707_s24 = sshll.u32 %s339_s22, 4  ;;  %s933_s16 = sshll.u32 %s1013_s12, 4  ;;  %s1187_s24 = int_to_ptr.vmem [resolvable:$true] %s707_s24  ;;  %s934_s16 = int_to_ptr.vmem [resolvable:$false] %s933_s16 }
  0x1e   : > { %840 = vmatpush3.msk.msra.mxu0 %vm479_vm3, %v1139_v7  ;;  %834 = vmatmul.mubr.msk.f32.vlgmr.msra.gmra.mrb[0].mxu1 %vm364_vm0, %v360_v5  ;;  %s929_s30 = scalar_lea.vmem %s1187_s24, 64  ;;  %s935_s14 = scalar_lea.vmem %s934_s16, 128 }
  0x1f   : > { %842 = vmatmul.mubr.msk.f32.vlgmr.msra.gmra.mrb[0].mxu0 %vm466_vm1, %v356_v8  ;;  %836 = vmatprep.mubr.msk.f32.mxu1 %vm364_vm0, %v361_v9  ;;  %p930_p12 = scmp.ne.s32.totalorder %s1187_s24, %s929_s30  ;;  %p936_p1 = scmp.lt.s32.totalorder %s1187_s24, %s934_s16 }
  0x20   : > { %844 = vmatprep.mubr.msk.f32.mxu0 %vm466_vm1, %v357_v10  ;;  %858 = vmatprep.subr.bf16.mxu1 %v1010_v17  ;;  %p937_p2 = scmp.lt.s32.totalorder %s935_s14, %s929_s30 }
  0x21   : > { %p931_p13 = pnand %p930_p12, %p1099_p4 }
  0x22   : > { %837 = vmatmul.mubr.msk.f32.gmra.mrb[2].mxu1 %vm364_vm0, %v362_v13  ;;  %p938_p3 = por %p937_p2, %p936_p1 }
  0x23   : > { %845 = vmatmul.mubr.msk.f32.gmra.mrb[2].mxu0 %vm466_vm1, %v358_v14  ;;  %855 = vmatprep.mubr.msk.f32.mxu1 %vm1011_vm4, %v1012_v18  ;;  %p932_p0 = pneg %p931_p13 }
  0x25   : > { %p939_p5 = pnand %p938_p3, %p932_p0 }
  0x91   : > { %v575_v19 = vpop.permute.xlu0 %574  ;;  %v585_v20 = vpop.permute.xlu1 %584 }
  0x95   : > { %v580_v26 = vpop.permute.xlu0 %579  ;;  %v590_v36 = vpop.permute.xlu1 %589 }
  0x99   : > { %v679_v46 = vpop.permute.xlu0 %678  ;;  %v687_v51 = vpop.permute.xlu1 %686 }
  0x9a   : > { %v681_v47 = vmul.f32 %v679_v46, %v1139_v7 }
  0xf1   : > { %v835_v21 = vpop.f32.mrb[0].mxu1 }
  0xf2   : > { %v843_v22 = vpop.f32.mrb[0].mxu0  ;;  %v447_v24 = vpop.f32.mrb[1].mxu1 }
  0xf3   : > { %v555_v23 = vadd.f32 %v843_v22, %v835_v21  ;;  %v549_v25 = vpop.f32.mrb[1].mxu0 }
  0xf4   : > { %v550_v27 = vadd.f32 %v549_v25, %v447_v24 }
  0xf5   : > { %v593_v28 = vsub.f32 %v555_v23, %v580_v26  ;;  %v838_v30 = vpop.f32.mrb[2].mxu1 }
  0xf6   : > { %v592_v29 = vsub.f32 %v550_v27, %v575_v19  ;;  %v846_v31 = vpop.f32.mrb[2].mxu0  ;;  %v457_v34 = vpop.f32.mrb[3].mxu1 }
  0xf7   : > { %v597_v32 = vmax.f32 %v593_v28, 0.0  ;;  %v565_v33 = vadd.f32 %v846_v31, %v838_v30  ;;  %v559_v35 = vpop.f32.mrb[3].mxu0 }
  0xf8   : > { %v596_v37 = vmax.f32 %v592_v29, 0.0  ;;  %v560_v38 = vadd.f32 %v559_v35, %v457_v34 }
  0xf9   : > { %v595_v39 = vsub.f32 %v565_v33, %v590_v36 }
  0xfa   : > { %v859_v40 = vpack.c.bf16 %v597_v32, %v596_v37  ;;  %v594_v41 = vsub.f32 %v560_v38, %v585_v20 }
  0xfb   : > { %v599_v42 = vmax.f32 %v595_v39, 0.0 }
  0xfc   : > { %v598_v43 = vmax.f32 %v594_v41, 0.0  ;;  %860 = vmatpush3.bf16.msra.mxu1 %v859_v40 }
  0xfd   : > { %861 = vmatprep.subr.bf16.mxu1 %v1010_v17 }
  0xfe   : > { %v862_v44 = vpack.c.bf16 %v599_v42, %v598_v43 }
 0x100   : > { %863 = vmatpush3.bf16.msra.mxu1 %v862_v44 }
 0x103   : > { %856 = vmatmul.mubr.msk.f32.vlgmr.msra.gmra.mrb[4].mxu1 %vm601_vm5, %v600_v45 }
 0x1d6   : > { %v671_v48 = vpop.f32.mrb[4].mxu1 }
 0x1d7   : > { %v682_v49 = vadd.f32 %v681_v47, %v671_v48  ;;  %v857_v50 = vpop.f32.mrb[5].mxu1 }
 0x1d9   : > { %v689_v52 = vadd.f32 %v687_v51, %v682_v49 }
 0x1db   : > { %691 = vst.msk [vmem:[%s339_s22] sm:$0xf] %vm690_vm6, %v689_v52 }
 0x1dc   : > { %942 = shalt.err (!%p939_p5)
}
 0x1dd   : > { %s943_s13 = scalar_lea.hbm %s1185_s23, 64  ;;  %s947_s21 = scalar_lea.hbm %s1240_s8, 128 }
 0x1de   : > { %p944_p6 = scmp.ne.s32.totalorder %s1185_s23, %s943_s13  ;;  %p948_p10 = scmp.lt.u32.totalorder %s1185_s23, %s1240_s8 }
 0x1df   : > { %p949_p11 = scmp.lt.u32.totalorder %s947_s21, %s943_s13  ;;  %p951_p13 = scmp.lt.u32.totalorder %s943_s13, %s1185_s23 }
 0x1e0   : > { %p945_p7 = pnand %p944_p6, %p1099_p4 }
 0x1e1   : > { %p950_p12 = por %p949_p11, %p948_p10 }
 0x1e2   : > { %p946_p9 = pneg %p945_p7 }
 0x1e3   : > { %p952_p0 = por %p951_p13, %p950_p12 }
 0x1e5   : > { %p953_p1 = pnand %p952_p0, %p946_p9 }
 0x1e7   : > { %956 = shalt.err (!%p953_p1)
}
 0x1e8   : > { %868 = dma.vmem_to_hbm [thread:$0]  (%p1099_p4), %s1187_s24, 64, %s1185_s23, %s693_s11  }
 0x1e9 PF: > { %p874_p2 = scmp.ge.s32.totalorder %s1007_s10, 2  ;;  %s719_s26 = sand.u32 1, %s987_s27  }
 0x1ea   : > { %s720_s30 = scalar_lea.sflag [#allocation3], %s719_s26 }
 0x1eb   : > { %p871_p3 = pnand %p874_p2, %p1106_p8 }
 0x1ed   : > { %982 = dma.done.wait (!%p871_p3), %s720_s30, 64  }
 0x1ee   : > { %984 = vsyncadd (!%p871_p3), %s720_s30, 4294967232  ;;  %s21_s10 = sadd.s32 1, %s1007_s10   ;;  %s1245_s15 = sld [smem:[#allocation5_spill]] }
 0x1ef   : > { %p18_p5 = scmp.ge.s32.totalorder %s21_s10, 4   ;;  %s1246_s27 = smov %s991_s28 }
 0x1f0   : > { %s1247_s28 = smov %s995_s29  ;;  %s1248_s29 = smov %s1112_s18 }
 0x1f1   : > { %s1249_s30 = smov %s1003_s9  ;;  %20 = sbr.rel (!%p18_p5) target bundleno = 4 (0x4), region = 90 }
 0x1f4   : > { %s1250_s9 = smov %s1245_s15 }
 0x1f8   :  { %725 = vsyncpa [#allocation3], 1 }
 0x1f9   :  { %727 = vsyncpa [#allocation3 + $0x1], 1 }

</bundles_post_ra>
